<compile_context>
chip_gen: v7x
topology: tpu7x:2x2x1
jax: 0.10.0
libtpu: 0.0.40
codegen_flags: <defaults>
</compile_context>

<pallas_src>
import functools

import jax
import jax.numpy as jnp
from jax.experimental import pallas as pl
from jax.experimental.pallas import tpu as pltpu

BN_EPS = 1e-5
LN_EPS = 1e-5

# Scoped-VMEM budget for the pallas_calls: big enough for THW up to ~16K even
# on v5e's small 16 MiB default, and <= v7x's 64 MiB physical VMEM.
_VMEM_LIMIT_BYTES = 48 * 1024 * 1024


def _round_up(x, m):
    return (x + m - 1) // m * m


def _pick_hw_pad(hw, tile_target):
    """Padded spatial length.  Usually == hw, i.e. no pad / no extra HBM copy."""
    if hw % 128 == 0 or hw <= tile_target:
        return hw                      # lane-aligned, or small enough for one full tile
    return _round_up(hw, 128)          # rare fallback: pad + trailing slice


def _divisor_tile(total, target):
    """Largest lane-aligned tile that divides `total` and is <= target."""
    if total % 128 != 0:
        return total                   # full-extent block (legal for any size)
    t = min((max(target, 128) // 128) * 128, total)
    while total % t != 0:
        t -= 128
    return t


# ---------------------------------------------------------------------------
# Pass 1: streaming raw moments of x (sum_x and Gram matrix x @ x^T).
# BN statistics of h = W1 @ x are recovered in the wrapper from these.
# ---------------------------------------------------------------------------
def _bn_moments_kernel(x_ref, sx_ref, sxx_ref):
    # x_ref: (Cin, THW).  Outputs are per-batch partial accumulators that stay
    # resident across the (inner, "arbitrary") tile axis.
    @pl.when(pl.program_id(1) == 0)
    def _():
        sx_ref[...] = jnp.zeros_like(sx_ref)
        sxx_ref[...] = jnp.zeros_like(sxx_ref)

    x = x_ref[...].astype(jnp.float32)                       # (Cin, THW)
    sx_ref[...] += jnp.sum(x, axis=1, keepdims=True)         # (Cin, 1)
    # Gram matrix via the MXU (K = THW, tiny M/N): sum_p x_p x_p^T.
    sxx_ref[...] += jax.lax.dot_general(
        x, x, (((1,), (1,)), ((), ())), preferred_element_type=jnp.float32)


# ---------------------------------------------------------------------------
# Pass 2: folded BN + ReLU + conv2 + fused shortcut + LayerNorm per tile.
# ---------------------------------------------------------------------------
def _apply_kernel(x_ref, w1s_ref, bn_s_ref, bn_b_ref, w2_ref, b2_ref,
                  ln_g_ref, ln_b_ref, o_ref, *, n_units, u_pad, elem_dtype):
    f32 = jnp.float32
    x = x_ref[...]                                           # (Cin, THW)
    if x.dtype != w1s_ref.dtype:
        x = x.astype(w1s_ref.dtype)

    # Fused main + shortcut matmul on x: one MXU weight push instead of two.
    hs = jnp.dot(w1s_ref[...], x, preferred_element_type=f32)  # (2U_p, THW)
    h = hs[:u_pad, :]                                        # conv1 branch
    s = hs[u_pad:, :]                                        # linear shortcut (f32)

    # Folded BatchNorm (global stats baked into scale/shift) + ReLU.
    # elem_dtype == bf16 only when matmul_dtype=bf16 (v6e/v7x); f32 otherwise.
    h = jnp.maximum(h.astype(elem_dtype) * bn_s_ref[...].astype(elem_dtype)
                    + bn_b_ref[...].astype(elem_dtype), 0.0)

    # Second 1x1 conv (with bias) + residual shortcut; accumulate in f32.
    y = (jnp.dot(w2_ref[...], h.astype(w2_ref.dtype),
                 preferred_element_type=f32)
         + b2_ref[...] + s)                                  # (U_p, THW) f32

    # LayerNorm over the channel axis.  Padded channel rows of y are exactly
    # zero, so summing over all U_p rows and dividing by the real n_units is
    # exact.  The channel reductions run on the MXU (ones @ y), keeping the
    # VALU/XLU slots free; statistics are one-pass E[y^2]-E[y]^2 in f32.
    inv_u = 1.0 / float(n_units)
    ones = jnp.ones((1, u_pad), f32)
    mu = jnp.dot(ones, y, preferred_element_type=f32) * inv_u       # (1, THW)
    ms = jnp.dot(ones, y * y, preferred_element_type=f32) * inv_u   # (1, THW)
    r = jax.lax.rsqrt(jnp.maximum(ms - mu * mu, 0.0) + LN_EPS)
    out = (y - mu) * r * ln_g_ref[...] + ln_b_ref[...]

    # Store only the real channels (output array has exactly n_units rows).
    o_ref[...] = out[:n_units, :].astype(o_ref.dtype)


# ---------------------------------------------------------------------------
# Wrapper
# ---------------------------------------------------------------------------
def mi1x1_convnet_forward(x_nchw, params, *, thw_target=8192, matmul_dtype=None,
                          out_dtype=None):
    """x_nchw: (N, Cin, H, W).  Returns (N, U, H, W).

    thw_target: spatial tile (lanes) for pass 2.  8192 fits every generation's
    default/raised scoped VMEM (incl. v7x); v5e/v6e can go 16384.
    matmul_dtype: set jnp.bfloat16 on v6e/v7x for MXU/VPU throughput (not v5e).
    """
    n, c_in, hh, ww = x_nchw.shape
    n_units = params["w2"].shape[0]
    hw = hh * ww
    m_real = float(n * hw)                                   # true pixel count

    f32 = jnp.float32
    mm_dtype = f32 if matmul_dtype is None else matmul_dtype
    o_dtype = x_nchw.dtype if out_dtype is None else out_dtype

    # Channel padding only to a multiple of 8 (sublanes); the lane axis is the
    # large spatial axis.
    u_pad = _round_up(n_units, 8)

    # Spatial tiling: pick tiles that divide H*W so no pad/slice HBM copies are
    # needed in the common case.  Pass 1 is DMA-bound with a tiny footprint, so
    # it gets a larger tile than pass 2.
    hw_pad = _pick_hw_pad(hw, thw_target)
    thw2 = _divisor_tile(hw_pad, thw_target)
    thw1 = _divisor_tile(hw_pad, 4 * thw_target)
    num_t2 = hw_pad // thw2
    num_t1 = hw_pad // thw1

    # (N, Cin, H, W) -> (N, Cin, HW): free reshape; pad only in the rare
    # non-lane-aligned + large-HW fallback.
    x = x_nchw.reshape(n, c_in, hw)
    if hw_pad != hw:
        x = jnp.pad(x, ((0, 0), (0, 0), (0, hw_pad - hw)))

    def pad_oc(a):  # zero-pad the output-channel (first) axis to u_pad
        return jnp.pad(a, ((0, u_pad - n_units),) + ((0, 0),) * (a.ndim - 1))

    w1 = pad_oc(params["w1"].astype(f32))                    # (U_p, Cin)
    ws = pad_oc(params["ws"].astype(f32))                    # (U_p, Cin)
    w2 = pad_oc(params["w2"].astype(f32))                    # (U_p, U)
    w2 = jnp.pad(w2, ((0, 0), (0, u_pad - n_units)))         # (U_p, U_p)
    w1s = jnp.concatenate([w1, ws], axis=0)                  # (2U_p, Cin)

    bn_g = pad_oc(params["bn_gamma"].astype(f32).reshape(n_units, 1))
    bn_b = pad_oc(params["bn_beta"].astype(f32).reshape(n_units, 1))
    b2 = pad_oc(params["b2"].astype(f32).reshape(n_units, 1))
    ln_g = pad_oc(params["ln_gamma"].astype(f32).reshape(n_units, 1))
    ln_b = pad_oc(params["ln_beta"].astype(f32).reshape(n_units, 1))

    # ---- Pass 1: streaming x-moments (per-batch partials -> megacore OK) ----
    sx_b, sxx_b = pl.pallas_call(
        _bn_moments_kernel,
        out_shape=(jax.ShapeDtypeStruct((n, c_in, 1), f32),
                   jax.ShapeDtypeStruct((n, c_in, c_in), f32)),
        grid_spec=pltpu.PrefetchScalarGridSpec(
            num_scalar_prefetch=0,
            grid=(n, num_t1),                                # reduction axis last
            in_specs=[pl.BlockSpec((None, c_in, thw1), lambda b, t: (b, 0, t))],
            out_specs=[pl.BlockSpec((None, c_in, 1), lambda b, t: (b, 0, 0)),
                       pl.BlockSpec((None, c_in, c_in), lambda b, t: (b, 0, 0))],
        ),
        compiler_params=pltpu.CompilerParams(
            dimension_semantics=("parallel", "arbitrary"),
            vmem_limit_bytes=_VMEM_LIMIT_BYTES),
    )(x)

    # Finalize BN on tiny tensors: recover per-channel sum / sum-of-squares of
    # h = W1 @ x from the raw x-moments, then fold mean/var/gamma/beta into a
    # single scale/shift.  (Training-mode batch statistics, biased variance.)
    sx = jnp.sum(sx_b, axis=0)                               # (Cin, 1)
    sxx = jnp.sum(sxx_b, axis=0)                             # (Cin, Cin)
    sums = w1 @ sx                                           # (U_p, 1)
    sqs = jnp.sum((w1 @ sxx) * w1, axis=1, keepdims=True)    # (U_p, 1)
    mean = sums / m_real
    var = jnp.maximum(sqs / m_real - mean * mean, 0.0)       # biased variance
    bn_scale = bn_g * jax.lax.rsqrt(var + BN_EPS)
    bn_shift = bn_b - mean * bn_scale

    # ---- Pass 2: apply everything, tiled & pipelined over pixels ------------
    kernel = functools.partial(_apply_kernel, n_units=n_units, u_pad=u_pad,
                               elem_dtype=mm_dtype)
    const2d = lambda shape: pl.BlockSpec(shape, lambda t, b: (0, 0))
    y = pl.pallas_call(
        kernel,
        out_shape=jax.ShapeDtypeStruct((n, n_units, hw_pad), o_dtype),
        grid_spec=pltpu.PrefetchScalarGridSpec(
            num_scalar_prefetch=0,
            grid=(num_t2, n),                 # larger axis first: 2-TC balance
            in_specs=[
                pl.BlockSpec((None, c_in, thw2), lambda t, b: (b, 0, t)),
                const2d((2 * u_pad, c_in)),   # fused [W1; Ws]
                const2d((u_pad, 1)),          # bn scale
                const2d((u_pad, 1)),          # bn shift
                const2d((u_pad, u_pad)),      # W2
                const2d((u_pad, 1)),          # b2
                const2d((u_pad, 1)),          # ln gamma
                const2d((u_pad, 1)),          # ln beta
            ],
            out_specs=pl.BlockSpec((None, n_units, thw2), lambda t, b: (b, 0, t)),
        ),
        compiler_params=pltpu.CompilerParams(
            dimension_semantics=("parallel", "parallel"),
            vmem_limit_bytes=_VMEM_LIMIT_BYTES),
    )(x, w1s.astype(mm_dtype), bn_scale, bn_shift, w2.astype(mm_dtype),
      b2, ln_g, ln_b)

    if hw_pad != hw:                          # rare fallback only
        y = y[:, :, :hw]
    return y.reshape(n, n_units, hh, ww)      # free reshape back to NCHW


# ---------------------------------------------------------------------------
# Pure-JAX reference (in-script correctness gate) and init.
# ---------------------------------------------------------------------------
def _reference_forward(x_nchw, params):
    n, c_in, hh, ww = x_nchw.shape
    n_units = params["w2"].shape[0]
    hi = jax.lax.Precision.HIGHEST
    xf = x_nchw.reshape(n, c_in, hh * ww).astype(jnp.float32)
    h = jnp.einsum("uc,nck->nuk", params["w1"], xf, precision=hi)
    mean = jnp.mean(h, axis=(0, 2), keepdims=True)
    var = jnp.mean((h - mean) ** 2, axis=(0, 2), keepdims=True)
    h = (h - mean) * jax.lax.rsqrt(var + BN_EPS)
    h = h * params["bn_gamma"].reshape(1, n_units, 1) + params["bn_beta"].reshape(1, n_units, 1)
    h = jnp.maximum(h, 0.0)
    y = jnp.einsum("uv,nvk->nuk", params["w2"], h, precision=hi)
    y = y + params["b2"].reshape(1, n_units, 1)
    y = y + jnp.einsum("uc,nck->nuk", params["ws"], xf, precision=hi)
    mu = jnp.mean(y, axis=1, keepdims=True)
    v = jnp.mean((y - mu) ** 2, axis=1, keepdims=True)
    y = (y - mu) * jax.lax.rsqrt(v + LN_EPS)
    y = y * params["ln_gamma"].reshape(1, n_units, 1) + params["ln_beta"].reshape(1, n_units, 1)
    return y.reshape(n, n_units, hh, ww)


def init_params(key, n_input, n_units):
    k1, k2, k3, k4 = jax.random.split(key, 4)
    lim1 = 1.0 / jnp.sqrt(jnp.float32(n_input))
    w1 = jax.random.uniform(k1, (n_units, n_input), jnp.float32, -lim1, lim1)
    lim2 = 1.0 / jnp.sqrt(jnp.float32(n_units))
    w2 = jax.random.uniform(k2, (n_units, n_units), jnp.float32, -lim2, lim2)
    b2 = jax.random.uniform(k3, (n_units,), jnp.float32, -lim2, lim2)

    # linear_shortcut: uniform(-0.01, 0.01) with the diagonal forced to 1.0
    # when n_units >= n_input (matching the PyTorch masked_fill init).
    ws = jax.random.uniform(k4, (n_units, n_input), jnp.float32, -0.01, 0.01)
    if n_units >= n_input:
        eye = jnp.zeros((n_units, n_input), jnp.bool_)
        eye = eye.at[jnp.arange(n_input), jnp.arange(n_input)].set(True)
        ws = jnp.where(eye, 1.0, ws)

    return {
        "w1": w1,
        "bn_gamma": jnp.ones((n_units,), jnp.float32),   # PyTorch BN default
        "bn_beta": jnp.zeros((n_units,), jnp.float32),
        "w2": w2,
        "b2": b2,
        "ws": ws,
        "ln_gamma": jnp.ones((n_units,), jnp.float32),   # PyTorch LN default
        "ln_beta": jnp.zeros((n_units,), jnp.float32),
    }


if __name__ == "__main__":
    key = jax.random.PRNGKey(0)
    kx, kp = jax.random.split(key)

    N, C_IN, H, W = 2, 4, 16, 16
    N_UNITS = 32

    x = jax.random.normal(kx, (N, C_IN, H, W), jnp.float32)
    params = init_params(kp, C_IN, N_UNITS)

    y = mi1x1_convnet_forward(x, params)
    jax.block_until_ready(y)
    assert y.shape == (N, N_UNITS, H, W), y.shape

    # Correctness gate against a pure-JAX reference of the PyTorch module
    # (training-mode BatchNorm batch statistics, biased variance).
    y_ref = _reference_forward(x, params)
    max_err = float(jnp.max(jnp.abs(y - y_ref)))
    assert max_err < 5e-2, f"max abs error vs reference: {max_err}"

    print("KERNEL_OK")
</pallas_src>

<mosaic_0001>
module attributes {stable_mosaic.version = 11 : i64} {
  func.func @_bn_moments_kernel(%arg0: i32, %arg1: i32, %arg2: memref<1x4x256xf32, #tpu.memory_space<vmem>>, %arg3: memref<1x4x1xf32, #tpu.memory_space<vmem>>, %arg4: memref<1x4x4xf32, #tpu.memory_space<vmem>>) attributes {dimension_semantics = [#tpu.dimension_semantics<parallel>, #tpu.dimension_semantics<arbitrary>], iteration_bounds = array<i64: 2, 1>, scalar_prefetch = 0 : i64, scratch_operands = 0 : i64, tpu.core_type = #tpu.core_type<tc>, window_params = [{transform_indices = @transform_0, window_bounds = array<i64: 1, 4, 256>}, {transform_indices = @transform_1, window_bounds = array<i64: 1, 4, 1>}, {transform_indices = @transform_2, window_bounds = array<i64: 1, 4, 4>}]} {
    %c0_i32 = arith.constant 0 : i32
    %0 = arith.cmpi eq, %arg1, %c0_i32 : i32
    %1 = arith.extui %0 : i1 to i32
    %c0_i32_0 = arith.constant 0 : i32
    %2 = arith.cmpi ne, %1, %c0_i32_0 : i32
    scf.if %2 {
      %cst_16 = arith.constant 0.000000e+00 : f32
      %20 = vector.broadcast %cst_16 : f32 to vector<4x1xf32>
      %c0_17 = arith.constant 0 : index
      %c0_18 = arith.constant 0 : index
      %c0_19 = arith.constant 0 : index
      %21 = vector.load %arg3[%c0_17, %c0_18, %c0_19] : memref<1x4x1xf32, #tpu.memory_space<vmem>>, vector<1x4x1xf32>
      %22 = vector.shape_cast %21 : vector<1x4x1xf32> to vector<4x1xf32>
      %23 = vector.shape_cast %20 : vector<4x1xf32> to vector<1x4x1xf32>
      tpu.vector_store %arg3[%c0_17, %c0_18, %c0_19], %23 {strides = array<i32>} : memref<1x4x1xf32, #tpu.memory_space<vmem>>, vector<1x4x1xf32>,
      %cst_20 = arith.constant 0.000000e+00 : f32
      %24 = vector.broadcast %cst_20 : f32 to vector<4x4xf32>
      %c0_21 = arith.constant 0 : index
      %c0_22 = arith.constant 0 : index
      %c0_23 = arith.constant 0 : index
      %25 = vector.load %arg4[%c0_21, %c0_22, %c0_23] : memref<1x4x4xf32, #tpu.memory_space<vmem>>, vector<1x4x4xf32>
      %26 = vector.shape_cast %25 : vector<1x4x4xf32> to vector<4x4xf32>
      %27 = vector.shape_cast %24 : vector<4x4xf32> to vector<1x4x4xf32>
      tpu.vector_store %arg4[%c0_21, %c0_22, %c0_23], %27 {strides = array<i32>} : memref<1x4x4xf32, #tpu.memory_space<vmem>>, vector<1x4x4xf32>,
    } else {
    }
    %c0 = arith.constant 0 : index
    %c0_1 = arith.constant 0 : index
    %c0_2 = arith.constant 0 : index
    %3 = vector.load %arg2[%c0, %c0_1, %c0_2] : memref<1x4x256xf32, #tpu.memory_space<vmem>>, vector<1x4x256xf32>
    %4 = vector.shape_cast %3 : vector<1x4x256xf32> to vector<4x256xf32>
    %c0_3 = arith.constant 0 : index
    %c0_4 = arith.constant 0 : index
    %c0_5 = arith.constant 0 : index
    %5 = vector.load %arg3[%c0_3, %c0_4, %c0_5] : memref<1x4x1xf32, #tpu.memory_space<vmem>>, vector<1x4x1xf32>
    %6 = vector.shape_cast %5 : vector<1x4x1xf32> to vector<4x1xf32>
    %cst = arith.constant dense<0.000000e+00> : vector<4xf32>
    %7 = vector.multi_reduction <add>, %4, %cst [1] : vector<4x256xf32> to vector<4xf32>
    %8 = vector.shape_cast %7 : vector<4xf32> to vector<4x1xf32>
    %9 = arith.addf %6, %8 : vector<4x1xf32>
    %c0_6 = arith.constant 0 : index
    %c0_7 = arith.constant 0 : index
    %c0_8 = arith.constant 0 : index
    %10 = vector.load %arg3[%c0_6, %c0_7, %c0_8] : memref<1x4x1xf32, #tpu.memory_space<vmem>>, vector<1x4x1xf32>
    %11 = vector.shape_cast %10 : vector<1x4x1xf32> to vector<4x1xf32>
    %12 = vector.shape_cast %9 : vector<4x1xf32> to vector<1x4x1xf32>
    tpu.vector_store %arg3[%c0_6, %c0_7, %c0_8], %12 {strides = array<i32>} : memref<1x4x1xf32, #tpu.memory_space<vmem>>, vector<1x4x1xf32>,
    %c0_9 = arith.constant 0 : index
    %c0_10 = arith.constant 0 : index
    %c0_11 = arith.constant 0 : index
    %13 = vector.load %arg4[%c0_9, %c0_10, %c0_11] : memref<1x4x4xf32, #tpu.memory_space<vmem>>, vector<1x4x4xf32>
    %14 = vector.shape_cast %13 : vector<1x4x4xf32> to vector<4x4xf32>
    %cst_12 = arith.constant dense<0.000000e+00> : vector<4x4xf32>
    %15 = tpu.matmul %4, %4, %cst_12 {dimension_numbers = #tpu.dot_dimension_numbers<[1], [1], [0], [0], [0, 0, 1, 0], [], []>} : vector<4x256xf32>, vector<4x256xf32>, vector<4x4xf32> -> vector<4x4xf32>
    %16 = arith.addf %14, %15 : vector<4x4xf32>
    %c0_13 = arith.constant 0 : index
    %c0_14 = arith.constant 0 : index
    %c0_15 = arith.constant 0 : index
    %17 = vector.load %arg4[%c0_13, %c0_14, %c0_15] : memref<1x4x4xf32, #tpu.memory_space<vmem>>, vector<1x4x4xf32>
    %18 = vector.shape_cast %17 : vector<1x4x4xf32> to vector<4x4xf32>
    %19 = vector.shape_cast %16 : vector<4x4xf32> to vector<1x4x4xf32>
    tpu.vector_store %arg4[%c0_13, %c0_14, %c0_15], %19 {strides = array<i32>} : memref<1x4x4xf32, #tpu.memory_space<vmem>>, vector<1x4x4xf32>,
    return
  }
  func.func @transform_0(%arg0: i32, %arg1: i32) -> (i32, i32, i32) {
    %c0_i32 = arith.constant 0 : i32
    %c0_i32_0 = arith.constant 0 : i32
    return %arg0, %c0_i32, %arg1 : i32, i32, i32
  }
  func.func @transform_1(%arg0: i32, %arg1: i32) -> (i32, i32, i32) {
    %c0_i32 = arith.constant 0 : i32
    %c0_i32_0 = arith.constant 0 : i32
    %c0_i32_1 = arith.constant 0 : i32
    return %arg0, %c0_i32, %c0_i32_0 : i32, i32, i32
  }
  func.func @transform_2(%arg0: i32, %arg1: i32) -> (i32, i32, i32) {
    %c0_i32 = arith.constant 0 : i32
    %c0_i32_0 = arith.constant 0 : i32
    %c0_i32_1 = arith.constant 0 : i32
    return %arg0, %c0_i32, %c0_i32_0 : i32, i32, i32
  }
}

</mosaic_0001>

<bundles_post_ra>
// kernel: tpu_custom_call.1
= control target key start
LH: loop header
LB: loop body
LE: loop exit
PB: predicated region body
PF: predicated region fallthrough
CT: control target
= control target key end

     0   :  { %8 = vsyncpa [#allocation3], 0  ;;  %s808_s0 = inlined_call_operand.hbm [shape: f32[2,4,256], index: 0, kind: input, shape index: {}]   ;;  %s809_s1 = inlined_call_operand.vmem [shape: f32[2,4,1], index: 1, kind: output, shape index: {0}]   ;;  %s810_s2 = inlined_call_operand.hbm [shape: f32[2,4,4], index: 2, kind: output, shape index: {1}]  }
   0x1   :  { %10 = vsyncpa [#allocation3 + $0x1], 0 }
   0x2   :  { %11 = vsyncpa [#allocation4], 0 }
   0x3   :  { %13 = vsyncpa [#allocation4 + $0x1], 0  ;;  %s622_s9 = smov 0   ;;  %s624_s10 = smov 0  }
   0x4   :  { %s626_s11 = smov 0   ;;  %s628_s12 = smov 0  }
   0x5   :  { %s630_s13 = smov 0   ;;  %s632_s14 = smov 0  }
   0x6 LB: > { %s410_s15 = sadd.s32 4294967295, %s602_s14   ;;  %s411_s16 = sadd.s32 4294967294, %s602_s14   ;;  %s602_s14 = sphi %s632_s14, %s19_s14   ;;  %s598_s13 = sphi %s630_s13, %s826_s13   ;;  %s594_s12 = sphi %s628_s12, %s825_s12   ;;  %s590_s11 = sphi %s626_s11, %s824_s11   ;;  %s586_s10 = sphi %s624_s10, %s823_s10   ;;  %s582_s9 = sphi %s622_s9, %s822_s9  }
   0x7   : > { %s31_s17 = sadd.s32 1, %s598_s13  ;;  %s40_s18 = sadd.s32 1, %s590_s11 }
   0x8   : > { %p33_p0 = scmp.ge.s32.totalorder %s31_s17, 2  ;;  %p47_p1 = scmp.ne.s32.totalorder %s590_s11, %s586_s10 }
   0x9   : > { %p48_p2 = scmp.eq.s32.totalorder %s602_s14, 0  ;;  %p53_p3 = scmp.ne.s32.totalorder %s586_s10, %s582_s9 }
   0xa   : > { %s828_s17 = smov (%p33_p0, %s31_s17), 0  ;;  %p54_p5 = scmp.eq.s32.totalorder %s410_s15, 0 }
   0xb   : > { %p663_p4 = por %p48_p2, %p47_p1  ;;  %s35_s20 = ssub.s32 %s598_s13, %s828_s17 }
   0xc   : > { %p103_p6 = scmp.eq.s32.totalorder %s410_s15, 1  ;;  %p38_p7 = scmp.eq.s32.totalorder %s35_s20, 0 }
   0xd   : > { %p669_p8 = por %p54_p5, %p53_p3  ;;  %p109_p10 = scmp.eq.s32.totalorder %s411_s16, 1 }
   0xe   : > { %p673_p9 = por %p103_p6, %p47_p1  ;;  %p438_p13 = scmp.lt.s32.totalorder %s602_s14, 2 }
   0xf   : > { %s678_s23 = scalar_select %p38_p7, %s590_s11, %s40_s18  }
  0x10   : > { %s814_s22 = scalar_select %p673_p9, 1, 0 }
  0x11   : > { %p680_p11 = por %p109_p10, %p53_p3  ;;  %s129_s25 = sand.u32 1, %s590_s11  }
  0x12   : > { %s414_s26 = sshll.u32 %s129_s25, 3  ;;  %s425_s27 = sshll.u32 %s598_s13, 7 }
  0x13   : > { %s815_s24 = scalar_select %p680_p11, 1, 0 }
  0x14   : > { %s691_s30 = scalar_lea.hbm %s808_s0, %s425_s27  ;;  %s133_s3 = scalar_lea.vmem [#allocation2], %s414_s26 }
  0x15   : > { %s143_s4 = sshll.u32 %s133_s3, 4  ;;  %p697_p0 = pnand %p438_p13, %p663_p4  ;;  %s693_s4 = int_to_ptr.vmem [resolvable:$true] %s143_s4 }
  0x16   : > { %s130_s6 = scalar_lea.sflag [#allocation3], %s129_s25  ;;  %s490_s7 = scalar_lea.hbm %s691_s30, 128 }
  0x17   : > { %p491_p3 = scmp.ne.s32.totalorder %s691_s30, %s490_s7  ;;  %p492_p5 = pneg %p697_p0 }
  0x18   : > { %s495_s16 = scalar_lea.hbm %s808_s0, 256  ;;  %p496_p4 = scmp.lt.u32.totalorder %s691_s30, %s808_s0 }
  0x19   : > { %p493_p6 = pnand %p492_p5, %p491_p3  ;;  %p497_p10 = scmp.lt.u32.totalorder %s495_s16, %s490_s7 }
  0x1a   : > { %p499_p12 = scmp.lt.u32.totalorder %s490_s7, %s691_s30 }
  0x1b   : > { %p494_p7 = pneg %p493_p6  ;;  %p498_p13 = por %p497_p10, %p496_p4 }
  0x1d   : > { %p500_p1 = por %p499_p12, %p498_p13 }
  0x1f   : > { %p501_p2 = pnand %p500_p1, %p494_p7 }
  0x21   : > { %504 = shalt.err (!%p501_p2)
}
  0x22   : > { %s505_s20 = scalar_lea.vmem %s693_s4, 128  ;;  %s604_s25 = smov [#allocation2]  }
  0x23   : > { %p506_p3 = scmp.ne.s32.totalorder %s693_s4, %s505_s20  ;;  %s510_s26 = sshll.u32 %s604_s25, 4  ;;  %s511_s26 = int_to_ptr.vmem [resolvable:$false] %s510_s26 }
  0x24   : > { %s512_s27 = scalar_lea.vmem %s511_s26, 256  ;;  %p513_p9 = scmp.lt.s32.totalorder %s693_s4, %s511_s26 }
  0x25   : > { %p508_p6 = pnand %p506_p3, %p492_p5  ;;  %p514_p4 = scmp.lt.s32.totalorder %s512_s27, %s505_s20 }
  0x27   : > { %p509_p11 = pneg %p508_p6  ;;  %p515_p10 = por %p514_p4, %p513_p9 }
  0x29   : > { %p516_p12 = pnand %p515_p10, %p509_p11 }
  0x2b   : > { %519 = shalt.err (!%p516_p12)
}
  0x2c   : > { %433 = dma.hbm_to_vmem [thread:$0]  (!%p697_p0), %s691_s30, 128, %s693_s4, %s130_s6  }
  0x2d   : > { %p817_p1 = scmp.lt.s32.totalorder %s602_s14, 3  ;;  %p818_p2 = scmp.ge.s32.totalorder %s602_s14, 1 }
  0x2f   : > { %p149_p5 = pnand %p818_p2, %p817_p1 }
  0x30   : > { %s733_s28 = sand.u32 (!%p149_p5), 1, %s586_s10  }
  0x31   : > { %152 = sbr.rel (%p149_p5) target bundleno = 292 (0x124), region = 24  ;;  %s418_s29 = sshll.u32 (!%p149_p5), %s733_s28, 3 }
  0x32   : > { %s155_s3 = scalar_lea.sflag (!%p149_p5), [#allocation3], %s733_s28  ;;  %s158_s7 = scalar_lea.vmem (!%p149_p5), [#allocation2], %s418_s29 }
  0x38   : > { %573 = dma.done.wait (%p669_p8), %s155_s3, 128  }
  0x39   : > { %575 = vsyncadd (%p669_p8), %s155_s3, 4294967168  ;;  %s419_s30 = sshll.u32 %s733_s28, 2  ;;  %vm194_vm0 = vcmask 27648   ;;  %v605_v0 = vmov 0.0   ;;  %vm201_vm1 = vcmask 1043456   ;;  %v196_v1 = vld [vmem:[%s158_s7] sm:$0xff] }
  0x3a   : > { %s742_s4 = scalar_lea.vmem [#allocation5], %s419_s30  ;;  %v199_v2 = vcombine.high %v196_v1, %v196_v1  ;;  %v202_v3 = vsel %vm201_vm1, %v196_v1, 0.0  ;;  %p184_p8 = scmp.lt.s32.totalorder %s594_s12, 1  ;;  %vm192_vm2 = vcmask 3072  }
  0x3b   : > { %195 = vst.msk [vmem:[%s742_s4] sm:$0xf] %vm194_vm0, %v605_v0  ;;  %s422_s16 = sshll.u32 %s594_s12, 6  ;;  %s305_s18 = sshll.u32 %s742_s4, 4  ;;  %s759_s18 = int_to_ptr.vmem [resolvable:$true] %s305_s18 }
  0x3c   : > { %211 = vmatprep.subr.mxu0 %v199_v2  ;;  %275 = vmatprep.mubr.f32.mxu0 %v199_v2  ;;  %v203_v4 = vsel %vm201_vm1, %v199_v2, 0.0  ;;  %s185_s21 = scalar_select %p184_p8, %s594_s12, 1 }
  0x3d   : > { %212 = vmatpush1.xpose.msra.mxu0 %v196_v1  ;;  %v204_v5 = vadd.f32 %v203_v4, %v202_v3  ;;  %s757_s25 = scalar_lea.hbm %s810_s2, %s422_s16  ;;  %s289_s26 = scalar_lea.sflag [#allocation4], %s733_s28 }
  0x3e   : > { %s420_s5 = sshll.u32 %s185_s21, 2  ;;  %s520_s27 = scalar_lea.vmem %s759_s18, 64 }
  0x3f   : > { %205 = vadd.xlane.f32.xlu0 %v204_v5  ;;  %s187_s15 = scalar_lea.vmem %s809_s1, %s420_s5  ;;  %p521_p9 = scmp.ne.s32.totalorder %s759_s18, %s520_s27 }
  0x40   : > { %276 = vmatmul.mubr.f32.vlgmr.msra.gmra.mrb[0].mxu0 %v196_v1  ;;  %193 = vst.msk [vmem:[%s187_s15] sm:$0xf] %vm192_vm2, %v605_v0  ;;  %p819_p11 = scmp.ne.s32.totalorder %s814_s22, 0  ;;  %s606_s12 = smov [#allocation5]  }
  0x41   : > { %s524_s29 = sshll.u32 %s606_s12, 4  ;;  %s525_s29 = int_to_ptr.vmem [resolvable:$false] %s524_s29 }
  0x42   : > { %v210_v9 = vld [vmem:[%s742_s4] sm:$0xf]  ;;  %p522_p0 = pnand %p521_p9, %p819_p11  ;;  %s526_s3 = scalar_lea.vmem %s525_s29, 128 }
  0x43   : > { %p527_p13 = scmp.lt.s32.totalorder %s759_s18, %s525_s29  ;;  %p528_p3 = scmp.lt.s32.totalorder %s526_s3, %s520_s27 }
  0x44   : > { %p523_p7 = pneg %p522_p0 }
  0x45   : > { %p529_p6 = por %p528_p3, %p527_p13 }
  0x47   : > { %v197_v6 = vld [vmem:[%s187_s15] sm:$0xf]  ;;  %p530_p4 = pnand %p529_p6, %p523_p7 }
  0xcc   : > { %v206_v7 = vpop.xlane.xlu0 %205 }
  0xcd   : > { %v207_v8 = vadd.f32 %v206_v7, %v197_v6 }
  0xcf   : > { %209 = vst.msk [vmem:[%s187_s15] sm:$0xf] %vm192_vm2, %v207_v8 }
 0x113   : > { %v277_v10 = vpop.f32.mrb[0].mxu0 }
 0x114   : > { %v281_v11 = vadd.f32 %v277_v10, %v210_v9  ;;  %v279_v12 = vpop.f32.mrb[1].mxu0 }
 0x116   : > { %283 = vst.msk [vmem:[%s742_s4] sm:$0xf] %vm194_vm0, %v281_v11 }
 0x117   : > { %533 = shalt.err (!%p530_p4)
}
 0x118   : > { %s534_s28 = scalar_lea.hbm %s757_s25, 64  ;;  %s538_s4 = scalar_lea.hbm %s810_s2, 128 }
 0x119   : > { %p535_p10 = scmp.ne.s32.totalorder %s757_s25, %s534_s28  ;;  %p539_p2 = scmp.lt.u32.totalorder %s757_s25, %s810_s2 }
 0x11a   : > { %p540_p5 = scmp.lt.u32.totalorder %s538_s4, %s534_s28  ;;  %p542_p9 = scmp.lt.u32.totalorder %s534_s28, %s757_s25 }
 0x11b   : > { %p536_p12 = pnand %p535_p10, %p819_p11 }
 0x11c   : > { %p541_p8 = por %p540_p5, %p539_p2 }
 0x11d   : > { %p537_p1 = pneg %p536_p12 }
 0x11e   : > { %p543_p0 = por %p542_p9, %p541_p8 }
 0x120   : > { %p544_p7 = pnand %p543_p0, %p537_p1 }
 0x122   : > { %547 = shalt.err (!%p544_p7)
}
 0x123   : > { %428 = dma.vmem_to_hbm [thread:$0]  (%p819_p11), %s759_s18, 64, %s757_s25, %s289_s26  }
 0x124 PF: > { %s324_s6 = sand.u32 1, %s582_s9   ;;  %p820_p13 = scmp.ne.s32.totalorder %s815_s24, 0 }
 0x125   : > { %p821_p3 = scmp.ge.s32.totalorder %s602_s14, 2  ;;  %s325_s8 = scalar_lea.sflag [#allocation4], %s324_s6 }
 0x127   : > { %p435_p6 = pnand %p821_p3, %p820_p13 }
 0x129   : > { %577 = dma.done.wait (!%p435_p6), %s325_s8, 64  }
 0x12a   : > { %579 = vsyncadd (!%p435_p6), %s325_s8, 4294967232  ;;  %s19_s14 = sadd.s32 1, %s602_s14   ;;  %s822_s9 = smov %s586_s10 }
 0x12b   : > { %p16_p4 = scmp.ge.s32.totalorder %s19_s14, 4   ;;  %s823_s10 = smov %s590_s11 }
 0x12c   : > { %s824_s11 = smov %s678_s23  ;;  %s825_s12 = smov %s598_s13 }
 0x12d   : > { %s826_s13 = smov %s828_s17  ;;  %18 = sbr.rel (!%p16_p4) target bundleno = 6 (0x6), region = 85 }
 0x134   :  { %330 = vsyncpa [#allocation3], 1 }
 0x135   :  { %332 = vsyncpa [#allocation3 + $0x1], 1 }
 0x136   :  { %333 = vsyncpa [#allocation4], 1 }
 0x137   :  { %335 = vsyncpa [#allocation4 + $0x1], 1 }

</bundles_post_ra>
